<compile_context>
chip_gen: v7x
topology: tpu7x:2x2x1
jax: 0.10.0
libtpu: 0.0.40
codegen_flags: <defaults>
</compile_context>

<pallas_src>
import functools

import jax
import jax.numpy as jnp
from jax.experimental import pallas as pl
from jax.experimental.pallas import tpu as pltpu


def _round_up(x, m):
    return (x + m - 1) // m * m


def _gemm_bias_lrelu_kernel(a_ref, b_ref, bias_ref, o_ref, acc_ref, *, neg_slope):
    """Grid point (i, j, k): acc += A(i,k) @ B(k,j); bias+LeakyReLU at k==last."""
    k = pl.program_id(2)

    @pl.when(k == 0)
    def _():
        acc_ref[...] = jnp.zeros_like(acc_ref)

    acc_ref[...] += jnp.dot(a_ref[...], b_ref[...],
                            preferred_element_type=jnp.float32)

    @pl.when(k == pl.num_programs(2) - 1)
    def _():
        acc = acc_ref[...] + bias_ref[...]               # f32 epilogue; bias (1, tn) broadcasts
        o_ref[...] = jnp.where(acc >= 0, acc, neg_slope * acc).astype(o_ref.dtype)


def _im2col(x, ks, pad, s):
    """x: (N, C, H, W) -> patches (N*Ho*Wo, C*ks*ks), K index order (c, kh, kw)."""
    N, C, H, W = x.shape
    xp = jnp.pad(x, ((0, 0), (0, 0), (pad, pad), (pad, pad)))
    Ho = (H + 2 * pad - ks) // s + 1
    Wo = (W + 2 * pad - ks) // s + 1
    cols = []
    for kh in range(ks):
        for kw in range(ks):
            cols.append(xp[:, :, kh:kh + s * Ho:s, kw:kw + s * Wo:s])  # (N, C, Ho, Wo)
    patches = jnp.stack(cols, axis=2)                      # (N, C, ks*ks, Ho, Wo)
    patches = jnp.transpose(patches, (0, 3, 4, 1, 2))      # (N, Ho, Wo, C, ks*ks)
    return patches.reshape(N * Ho * Wo, C * ks * ks), Ho, Wo


def conv_sn_relu(x, weight, bias, *, ks=5, pad=2, s=2, neg_slope=0.01,
                 tm=512, tn=256, tk=512):
    """Equivalent of ConvSNRelu(spec=False).forward(x) for NCHW float32 input."""
    N, C, H, W = x.shape
    out_c = weight.shape[0]

    patches, Ho, Wo = _im2col(x, ks, pad, s)               # (M, K) f32
    M, K = patches.shape
    w_mat = weight.reshape(out_c, C * ks * ks).T           # (K, out_c)

    # --- tile sizes (lane = 128, sublane = 8), clamped to the problem size ---
    tk = min(tk, _round_up(K, 128))
    tn = min(tn, _round_up(out_c, 128))
    tm = min(tm, _round_up(M, 8))
    Kp = _round_up(K, tk)
    Np = _round_up(out_c, tn)
    Mp = _round_up(M, tm)

    # Megacore (v7x): ensure the parallel (M, N) portion of the grid has >= 2 steps.
    if (Mp // tm) * (Np // tn) < 2 and tm >= 16 and (tm // 2) % 8 == 0:
        tm //= 2

    grid = (Mp // tm, Np // tn, Kp // tk)

    # bf16 GEMM operands (f32 accumulation in-kernel); bias stays f32 for the epilogue.
    a = jnp.pad(patches.astype(jnp.bfloat16), ((0, Mp - M), (0, Kp - K)))
    b = jnp.pad(w_mat.astype(jnp.bfloat16), ((0, Kp - K), (0, Np - out_c)))
    bias_p = jnp.pad(bias.astype(jnp.float32), (0, Np - out_c)).reshape(1, Np)

    cost = pl.CostEstimate(
        flops=2 * M * K * out_c,
        transcendentals=0,
        bytes_accessed=M * K * 2 + K * out_c * 2 + out_c * 4 + M * out_c * 4)

    # VMEM budget: double-buffered bf16 A/B tiles + f32 out (double-buffered) + f32 acc.
    vmem_bytes = (2 * tm * tk * 2 + 2 * tk * tn * 2 + 2 * tn * 4
                  + 2 * tm * tn * 4 + tm * tn * 4)
    vmem_limit = min(max(2 * vmem_bytes, 16 * 1024 * 1024), 64 * 1024 * 1024)

    out = pl.pallas_call(
        functools.partial(_gemm_bias_lrelu_kernel, neg_slope=neg_slope),
        out_shape=jax.ShapeDtypeStruct((Mp, Np), jnp.float32),
        grid_spec=pltpu.PrefetchScalarGridSpec(
            num_scalar_prefetch=0,
            grid=grid,
            in_specs=[
                pl.BlockSpec((tm, tk), lambda i, j, k: (i, k)),   # A tile
                pl.BlockSpec((tk, tn), lambda i, j, k: (k, j)),   # B tile
                pl.BlockSpec((1, tn), lambda i, j, k: (0, j)),    # bias tile
            ],
            out_specs=pl.BlockSpec((tm, tn), lambda i, j, k: (i, j)),
            scratch_shapes=[pltpu.VMEM((tm, tn), jnp.float32)],
        ),
        compiler_params=pltpu.CompilerParams(
            dimension_semantics=("parallel", "parallel", "arbitrary"),
            vmem_limit_bytes=vmem_limit),
        cost_estimate=cost,
    )(a, b, bias_p)

    out = out[:M, :out_c].reshape(N, Ho, Wo, out_c)        # (N, Ho, Wo, out_c)
    return jnp.transpose(out, (0, 3, 1, 2))                # back to NCHW


if __name__ == "__main__":
    # Small shapes consistent with the module: batch=2, in_c=4, out_c=8, spatial=16.
    in_c, out_c, ks, pad, s = 4, 8, 5, 2, 2
    key = jax.random.PRNGKey(0)
    kx, kw_, kb = jax.random.split(key, 3)

    x = jax.random.normal(kx, (2, in_c, 16, 16), dtype=jnp.float32)

    # Deterministic parameter init (PyTorch-style uniform bound 1/sqrt(fan_in)).
    fan_in = in_c * ks * ks
    bound = 1.0 / (fan_in ** 0.5)
    weight = jax.random.uniform(kw_, (out_c, in_c, ks, ks), jnp.float32, -bound, bound)
    bias = jax.random.uniform(kb, (out_c,), jnp.float32, -bound, bound)

    y = conv_sn_relu(x, weight, bias, ks=ks, pad=pad, s=s)
    jax.block_until_ready(y)

    # Reference on the same bf16-rounded operands (kernel multiplies in bf16,
    # accumulates in f32), so only accumulation-order noise remains.
    x_r = x.astype(jnp.bfloat16).astype(jnp.float32)
    w_r = weight.astype(jnp.bfloat16).astype(jnp.float32)
    ref = jax.lax.conv_general_dilated(
        x_r, w_r, window_strides=(s, s), padding=[(pad, pad), (pad, pad)],
        dimension_numbers=("NCHW", "OIHW", "NCHW"))
    ref = ref + bias[None, :, None, None]
    ref = jnp.where(ref >= 0, ref, 0.01 * ref)

    assert y.shape == (2, out_c, 8, 8), y.shape
    max_err = float(jnp.max(jnp.abs(y - ref)))
    assert jnp.allclose(y, ref, atol=2e-3, rtol=2e-3), max_err

    print("KERNEL_OK")
</pallas_src>

<mosaic_0001>
module attributes {stable_mosaic.version = 11 : i64} {
  func.func @_gemm_bias_lrelu_kernel(%arg0: i32, %arg1: i32, %arg2: i32, %arg3: memref<64x128xbf16, #tpu.memory_space<vmem>>, %arg4: memref<128x128xbf16, #tpu.memory_space<vmem>>, %arg5: memref<1x128xf32, #tpu.memory_space<vmem>>, %arg6: memref<64x128xf32, #tpu.memory_space<vmem>>, %arg7: memref<64x128xf32, #tpu.memory_space<vmem>>) attributes {dimension_semantics = [#tpu.dimension_semantics<parallel>, #tpu.dimension_semantics<parallel>, #tpu.dimension_semantics<arbitrary>], iteration_bounds = array<i64: 2, 1, 1>, scalar_prefetch = 0 : i64, scratch_operands = 1 : i64, tpu.core_type = #tpu.core_type<tc>, window_params = [{transform_indices = @transform_0, window_bounds = array<i64: 64, 128>}, {transform_indices = @transform_1, window_bounds = array<i64: 128, 128>}, {transform_indices = @transform_2, window_bounds = array<i64: 1, 128>}, {transform_indices = @transform_3, window_bounds = array<i64: 64, 128>}]} {
    %c0_i32 = arith.constant 0 : i32
    %0 = arith.cmpi eq, %arg2, %c0_i32 : i32
    %1 = arith.extui %0 : i1 to i32
    %c0_i32_0 = arith.constant 0 : i32
    %2 = arith.cmpi ne, %1, %c0_i32_0 : i32
    scf.if %2 {
      %cst_10 = arith.constant 0.000000e+00 : f32
      %12 = vector.broadcast %cst_10 : f32 to vector<64x128xf32>
      %c0_11 = arith.constant 0 : index
      %c0_12 = arith.constant 0 : index
      %13 = vector.load %arg7[%c0_11, %c0_12] : memref<64x128xf32, #tpu.memory_space<vmem>>, vector<64x128xf32>
      tpu.vector_store %arg7[%c0_11, %c0_12], %12 {strides = array<i32>} : memref<64x128xf32, #tpu.memory_space<vmem>>, vector<64x128xf32>,
    } else {
    }
    %c0 = arith.constant 0 : index
    %c0_1 = arith.constant 0 : index
    %3 = vector.load %arg7[%c0, %c0_1] : memref<64x128xf32, #tpu.memory_space<vmem>>, vector<64x128xf32>
    %c0_2 = arith.constant 0 : index
    %c0_3 = arith.constant 0 : index
    %4 = vector.load %arg3[%c0_2, %c0_3] : memref<64x128xbf16, #tpu.memory_space<vmem>>, vector<64x128xbf16>
    %c0_4 = arith.constant 0 : index
    %c0_5 = arith.constant 0 : index
    %5 = vector.load %arg4[%c0_4, %c0_5] : memref<128x128xbf16, #tpu.memory_space<vmem>>, vector<128x128xbf16>
    %cst = arith.constant dense<0.000000e+00> : vector<64x128xf32>
    %6 = tpu.matmul %4, %5, %cst {dimension_numbers = #tpu.dot_dimension_numbers<[1], [0], [0], [1], [0, 0, 1, 1], [], []>} : vector<64x128xbf16>, vector<128x128xbf16>, vector<64x128xf32> -> vector<64x128xf32>
    %7 = arith.addf %3, %6 : vector<64x128xf32>
    %c0_6 = arith.constant 0 : index
    %c0_7 = arith.constant 0 : index
    %8 = vector.load %arg7[%c0_6, %c0_7] : memref<64x128xf32, #tpu.memory_space<vmem>>, vector<64x128xf32>
    tpu.vector_store %arg7[%c0_6, %c0_7], %7 {strides = array<i32>} : memref<64x128xf32, #tpu.memory_space<vmem>>, vector<64x128xf32>,
    %c0_i32_8 = arith.constant 0 : i32
    %9 = arith.cmpi eq, %arg2, %c0_i32_8 : i32
    %10 = arith.extui %9 : i1 to i32
    %c0_i32_9 = arith.constant 0 : i32
    %11 = arith.cmpi ne, %10, %c0_i32_9 : i32
    scf.if %11 {
      %c0_10 = arith.constant 0 : index
      %c0_11 = arith.constant 0 : index
      %12 = vector.load %arg7[%c0_10, %c0_11] : memref<64x128xf32, #tpu.memory_space<vmem>>, vector<64x128xf32>
      %c0_12 = arith.constant 0 : index
      %c0_13 = arith.constant 0 : index
      %13 = vector.load %arg5[%c0_12, %c0_13] : memref<1x128xf32, #tpu.memory_space<vmem>>, vector<1x128xf32>
      %14 = vector.broadcast %13 : vector<1x128xf32> to vector<64x128xf32>
      %15 = arith.addf %12, %14 : vector<64x128xf32>
      %cst_14 = arith.constant 0.000000e+00 : f32
      %16 = vector.broadcast %cst_14 : f32 to vector<64x128xf32>
      %17 = arith.cmpf oge, %15, %16 : vector<64x128xf32>
      %cst_15 = arith.constant 0.00999999977 : f32
      %18 = vector.broadcast %cst_15 : f32 to vector<64x128xf32>
      %19 = arith.mulf %18, %15 : vector<64x128xf32>
      %20 = arith.select %17, %15, %19 : vector<64x128xi1>, vector<64x128xf32>
      %c0_16 = arith.constant 0 : index
      %c0_17 = arith.constant 0 : index
      %21 = vector.load %arg6[%c0_16, %c0_17] : memref<64x128xf32, #tpu.memory_space<vmem>>, vector<64x128xf32>
      tpu.vector_store %arg6[%c0_16, %c0_17], %20 {strides = array<i32>} : memref<64x128xf32, #tpu.memory_space<vmem>>, vector<64x128xf32>,
    } else {
    }
    return
  }
  func.func @transform_0(%arg0: i32, %arg1: i32, %arg2: i32) -> (i32, i32) {
    %c0_i32 = arith.constant 0 : i32
    return %arg0, %arg2 : i32, i32
  }
  func.func @transform_1(%arg0: i32, %arg1: i32, %arg2: i32) -> (i32, i32) {
    %c0_i32 = arith.constant 0 : i32
    return %arg2, %arg1 : i32, i32
  }
  func.func @transform_2(%arg0: i32, %arg1: i32, %arg2: i32) -> (i32, i32) {
    %c0_i32 = arith.constant 0 : i32
    %c0_i32_0 = arith.constant 0 : i32
    return %c0_i32, %arg1 : i32, i32
  }
  func.func @transform_3(%arg0: i32, %arg1: i32, %arg2: i32) -> (i32, i32) {
    %c0_i32 = arith.constant 0 : i32
    return %arg0, %arg1 : i32, i32
  }
}

</mosaic_0001>

<bundles_post_ra>
// kernel: tpu_custom_call.1
= control target key start
LH: loop header
LB: loop body
LE: loop exit
PB: predicated region body
PF: predicated region fallthrough
CT: control target
= control target key end

     0   :  { %8 = vsyncpa [#allocation4], 0  ;;  %s1234_s0 = inlined_call_operand.hbm [shape: bf16[128,128], index: 0, kind: input, shape index: {}]   ;;  %s1235_s1 = inlined_call_operand.hbm [shape: bf16[128,128], index: 1, kind: input, shape index: {}]   ;;  %s1236_s2 = inlined_call_operand.vmem [shape: f32[1,128], index: 2, kind: input, shape index: {}]   ;;  %s1237_s3 = inlined_call_operand.hbm [shape: f32[128,128], index: 3, kind: output, shape index: {}]  }
   0x1   :  { %10 = vsyncpa [#allocation4 + $0x1], 0 }
   0x2   :  { %11 = vsyncpa [#allocation7], 0 }
   0x3   :  { %12 = vsyncpa [#allocation5], 0 }
   0x4   :  { %14 = vsyncpa [#allocation5 + $0x1], 0  ;;  %s988_s12 = smov 0   ;;  %s990_s13 = smov 0  }
   0x5   :  { %s992_s14 = smov 0   ;;  %s994_s15 = smov 0  }
   0x6   :  { %s996_s16 = smov 0   ;;  %s998_s17 = smov 0  }
   0x7 LB: > { %s641_s18 = sadd.s32 4294967295, %s959_s17   ;;  %s642_s19 = sadd.s32 4294967294, %s959_s17   ;;  %s959_s17 = sphi %s998_s17, %s20_s17   ;;  %s955_s16 = sphi %s996_s16, %s1261_s16   ;;  %s951_s15 = sphi %s994_s15, %s1260_s15   ;;  %s947_s14 = sphi %s992_s14, %s1259_s14   ;;  %s943_s13 = sphi %s990_s13, %s1258_s13   ;;  %s939_s12 = sphi %s988_s12, %s1257_s12  }
   0x8   : > { %p61_p0 = scmp.ne.s32.totalorder %s943_s13, %s939_s12  ;;  %p1022_p1 = scmp.eq.s32.totalorder %s641_s18, 0 }
   0x9   : > { %p1026_p2 = scmp.eq.s32.totalorder %s641_s18, 1  ;;  %p147_p3 = scmp.eq.s32.totalorder %s642_s19, 1 }
   0xa   : > { %s1242_s20 = scalar_select %p1022_p1, 1, 0 }
   0xb   : > { %s1243_s21 = scalar_select %p1026_p2, 1, 0 }
   0xc   : > { %p1032_p4 = por %p1022_p1, %p61_p0  ;;  %p643_p5 = scmp.ge.s32.totalorder %s959_s17, 1 }
   0xd   : > { %p1037_p6 = por %p147_p3, %p61_p0  ;;  %p154_p7 = scmp.lt.s32.totalorder %s959_s17, 3 }
   0xe   : > { %s1244_s22 = scalar_select %p1032_p4, 1, 0 }
   0xf   : > { %s1245_s23 = scalar_select %p1037_p6, 1, 0 }
  0x10   : > { %p1042_p8 = pnand %p643_p5, %p154_p7  ;;  %s961_s25 = smov [#allocation6]  }
  0x11   : > { %s170_s26 = sshll.u32 %s961_s25, 4  ;;  %s39_s28 = sadd.s32 1, %s955_s16  ;;  %s171_s26 = int_to_ptr.vmem [resolvable:$true] %s170_s26 }
  0x12   : > { %s1246_s24 = scalar_select %p1042_p8, 1, 0 }
  0x13   : > { %p734_p9 = pneg %p1042_p8  ;;  %s815_s4 = scalar_lea.hbm %s1235_s1, 1024 }
  0x14   : > { %p816_p12 = scmp.ne.s32.totalorder %s1235_s1, %s815_s4  ;;  %p822_p5 = scmp.lt.u32.totalorder %s815_s4, %s1235_s1 }
  0x15   : > { %p1051_p11 = pnand %p734_p9, %p1022_p1 }
  0x17   : > { %p817_p13 = pneg %p1051_p11 }
  0x19   : > { %p818_p0 = pnand %p817_p13, %p816_p12 }
  0x1b   : > { %p819_p3 = pneg %p818_p0 }
  0x1d   : > { %p824_p7 = pnand %p822_p5, %p819_p3 }
  0x1f   : > { %827 = shalt.err (!%p824_p7)
}
  0x20   : > { %s828_s9 = scalar_lea.vmem %s171_s26, 1024  ;;  %p836_p1 = scmp.lt.s32.totalorder %s171_s26, %s171_s26 }
  0x21   : > { %p829_p9 = scmp.ne.s32.totalorder %s171_s26, %s828_s9  ;;  %p837_p4 = scmp.lt.s32.totalorder %s828_s9, %s828_s9 }
  0x23   : > { %p831_p10 = pnand %p829_p9, %p817_p13  ;;  %p838_p8 = por %p837_p4, %p836_p1 }
  0x25   : > { %p832_p6 = pneg %p831_p10 }
  0x27   : > { %p839_p2 = pnand %p838_p8, %p832_p6 }
  0x29   : > { %842 = shalt.err (!%p839_p2)
}
  0x2a   : > { %s962_s10 = smov 64   ;;  %s963_s11 = smov 4  }
  0x2b   : > { %737 = dma.hbm_to_vmem [thread:$0]  (!%p1051_p11), %s1235_s1, 1024, %s171_s26, [#allocation7], %s962_s10, %s962_s10, %s963_s11  }
  0x2c   : > { %p41_p1 = scmp.ge.s32.totalorder %s39_s28, 2  ;;  %s48_s25 = sadd.s32 1, %s947_s14 }
  0x2d   : > { %p55_p2 = scmp.ne.s32.totalorder %s947_s14, %s943_s13  ;;  %p56_p4 = scmp.eq.s32.totalorder %s959_s17, 0 }
  0x2e   : > { %s1263_s28 = smov (%p41_p1, %s39_s28), 0  ;;  %p1249_p8 = scmp.ne.s32.totalorder %s1243_s21, 0 }
  0x2f   : > { %p1081_p6 = por %p56_p4, %p55_p2  ;;  %s43_s30 = ssub.s32 %s955_s16, %s1263_s28 }
  0x30   : > { %p1087_p10 = por %p1249_p8, %p55_p2  ;;  %p747_p12 = scmp.lt.s32.totalorder %s959_s17, 2 }
  0x31   : > { %p46_p11 = scmp.eq.s32.totalorder %s43_s30, 0  ;;  %s190_s26 = sand.u32 1, %s947_s14  }
  0x32   : > { %s647_s4 = sshll.u32 %s190_s26, 5  ;;  %s672_s6 = sshll.u32 %s955_s16, 9 }
  0x33   : > { %s1096_s5 = scalar_select %p46_p11, %s947_s14, %s48_s25  }
  0x34   : > { %s1102_s9 = scalar_lea.hbm %s1234_s0, %s672_s6  ;;  %s194_s21 = scalar_lea.vmem [#allocation3], %s647_s4 }
  0x35   : > { %s202_s18 = sshll.u32 %s194_s21, 4  ;;  %p1108_p13 = pnand %p747_p12, %p1081_p6  ;;  %s1104_s18 = int_to_ptr.vmem [resolvable:$true] %s202_s18 }
  0x36   : > { %s1112_s25 = scalar_lea.sflag [#allocation4], %s190_s26  ;;  %s843_s30 = scalar_lea.hbm %s1102_s9, 512 }
  0x37   : > { %p844_p0 = scmp.ne.s32.totalorder %s1102_s9, %s843_s30  ;;  %p845_p3 = pneg %p1108_p13 }
  0x38   : > { %s848_s29 = scalar_lea.hbm %s1234_s0, 1024  ;;  %p849_p9 = scmp.lt.u32.totalorder %s1102_s9, %s1234_s0 }
  0x39   : > { %p846_p5 = pnand %p845_p3, %p844_p0  ;;  %p850_p1 = scmp.lt.u32.totalorder %s848_s29, %s843_s30 }
  0x3a   : > { %p852_p4 = scmp.lt.u32.totalorder %s843_s30, %s1102_s9 }
  0x3b   : > { %p847_p7 = pneg %p846_p5  ;;  %p851_p2 = por %p850_p1, %p849_p9 }
  0x3d   : > { %p853_p6 = por %p852_p4, %p851_p2 }
  0x3f   : > { %p854_p8 = pnand %p853_p6, %p847_p7 }
  0x41   : > { %857 = shalt.err (!%p854_p8)
}
  0x42   : > { %s858_s26 = scalar_lea.vmem %s1104_s18, 512  ;;  %s964_s21 = smov [#allocation3]  }
  0x43   : > { %p859_p12 = scmp.ne.s32.totalorder %s1104_s18, %s858_s26  ;;  %s863_s4 = sshll.u32 %s964_s21, 4  ;;  %s864_s4 = int_to_ptr.vmem [resolvable:$false] %s863_s4 }
  0x44   : > { %s865_s6 = scalar_lea.vmem %s864_s4, 1024  ;;  %p866_p5 = scmp.lt.s32.totalorder %s1104_s18, %s864_s4 }
  0x45   : > { %p861_p11 = pnand %p859_p12, %p845_p3  ;;  %p867_p9 = scmp.lt.s32.totalorder %s865_s6, %s858_s26 }
  0x47   : > { %p862_p0 = pneg %p861_p11  ;;  %p868_p1 = por %p867_p9, %p866_p5 }
  0x49   : > { %p869_p2 = pnand %p868_p1, %p862_p0 }
  0x4b   : > { %872 = shalt.err (!%p869_p2)
}
  0x4c   : > { %741 = dma.hbm_to_vmem [thread:$0]  (!%p1108_p13), %s1102_s9, 512, %s1104_s18, %s1112_s25, %s962_s10, %s962_s10, %s963_s11  }
  0x4d   : > { %p1252_p3 = scmp.ne.s32.totalorder %s1246_s24, 0 }
  0x4e   : > { %s1146_s30 = sand.u32 (!%p1252_p3), 1, %s943_s13   ;;  %p1253_p7 = scmp.ne.s32.totalorder (!%p1252_p3), %s1244_s22, 0 }
  0x4f   : > { %214 = sbr.rel (%p1252_p3) target bundleno = 361 (0x169), region = 32  ;;  %s651_s29 = sshll.u32 (!%p1252_p3), %s1146_s30, 5 }
  0x50   : > { %s217_s7 = scalar_lea.sflag (!%p1252_p3), [#allocation4], %s1146_s30  ;;  %s1150_s8 = scalar_lea.vmem (!%p1252_p3), [#allocation3], %s651_s29 }
  0x56   : > { %926 = dma.done.wait (%p1253_p7), %s217_s7, 512  }
  0x57   : > { %928 = vsyncadd (%p1253_p7), %s217_s7, 4294966784  ;;  %p1254_p13 = scmp.ne.s32.totalorder %s1242_s20, 0 }
  0x59   : > { %930 = dma.done.wait (%p1254_p13), [#allocation7], 1024  }
  0x5a   : > { %932 = vsyncadd (%p1254_p13), [#allocation7], 4294966272  ;;  %v803_v0 = vld [vmem:[#allocation6] sm:$0xff]   ;;  %v804_v1 = vld [vmem:[#allocation6 + $0x8] sm:$0xff]   ;;  %s653_s24 = sshll.u32 %s1146_s30, 6  ;;  %s673_s9 = sshll.u32 %s951_s15, 10 }
  0x5b   : > { %686 = vmatprep.subr.bf16.mxu0 %v803_v0  ;;  %710 = vmatprep.subr.bf16.mxu1 %v803_v0  ;;  %v805_v2 = vld [vmem:[#allocation6 + $0x10] sm:$0xff]   ;;  %v806_v3 = vld [vmem:[#allocation6 + $0x18] sm:$0xff]   ;;  %v811_v4 = vld [vmem:[%s1150_s8] sm:$0xff]   ;;  %s1168_s10 = scalar_lea.vmem [#allocation8], %s653_s24  ;;  %s1181_s19 = scalar_lea.hbm %s1237_s3, %s673_s9 }
  0x5c   : > { %687 = vmatpush3.bf16.msra.mxu0 %v803_v0  ;;  %718 = vmatpush3.bf16.msra.mxu1 %v803_v0  ;;  %v812_v5 = vld [vmem:[%s1150_s8 + $0x10] sm:$0xff]   ;;  %v807_v6 = vld [vmem:[#allocation6 + $0x20] sm:$0xff]   ;;  %v808_v7 = vld [vmem:[#allocation6 + $0x28] sm:$0xff]   ;;  %s527_s11 = sshll.u32 %s1168_s10, 4  ;;  %s513_s25 = scalar_lea.sflag [#allocation5], %s1146_s30  ;;  %s1176_s11 = int_to_ptr.vmem [resolvable:$true] %s527_s11 }
  0x5d   : > { %688 = vmatprep.subr.bf16.mxu0 %v804_v1  ;;  %711 = vmatprep.subr.bf16.mxu1 %v804_v1  ;;  %v809_v8 = vld [vmem:[#allocation6 + $0x30] sm:$0xff]   ;;  %v810_v9 = vld [vmem:[#allocation6 + $0x38] sm:$0xff]   ;;  %v813_v10 = vld [vmem:[%s1150_s8 + $0x8] sm:$0xff]   ;;  %s873_s26 = scalar_lea.vmem %s1176_s11, 1024  ;;  %s965_s21 = smov [#allocation8]  }
  0x5e   : > { %702 = vmatprep.mubr.bf16.mxu0 %v811_v4  ;;  %706 = vmatprep.mubr.bf16.mxu1 %v812_v5  ;;  %v814_v11 = vld [vmem:[%s1150_s8 + $0x18] sm:$0xff]   ;;  %v666_v12 = vld [vmem:[%s1236_s2] ss:$0 sm:$0xff]  ;;  %p874_p4 = scmp.ne.s32.totalorder %s1176_s11, %s873_s26  ;;  %s877_s4 = sshll.u32 %s965_s21, 4  ;;  %s878_s4 = int_to_ptr.vmem [resolvable:$false] %s877_s4 }
  0x5f   : > { %s879_s6 = scalar_lea.vmem %s878_s4, 2048  ;;  %p880_p12 = scmp.lt.s32.totalorder %s1176_s11, %s878_s4 }
  0x60   : > { %689 = vmatpush3.bf16.msra.mxu0 %v804_v1  ;;  %719 = vmatpush3.bf16.msra.mxu1 %v804_v1  ;;  %p875_p6 = pnand %p874_p4, %p1087_p10  ;;  %p881_p11 = scmp.lt.s32.totalorder %s879_s6, %s873_s26 }
  0x61   : > { %690 = vmatprep.subr.bf16.mxu0 %v805_v2  ;;  %712 = vmatprep.subr.bf16.mxu1 %v805_v2 }
  0x62   : > { %p876_p8 = pneg %p875_p6  ;;  %p882_p0 = por %p881_p11, %p880_p12 }
  0x64   : > { %691 = vmatpush3.bf16.msra.mxu0 %v805_v2  ;;  %720 = vmatpush3.bf16.msra.mxu1 %v805_v2  ;;  %p883_p5 = pnand %p882_p0, %p876_p8 }
  0x65   : > { %692 = vmatprep.subr.bf16.mxu0 %v806_v3  ;;  %713 = vmatprep.subr.bf16.mxu1 %v806_v3 }
  0x68   : > { %693 = vmatpush3.bf16.msra.mxu0 %v806_v3  ;;  %721 = vmatpush3.bf16.msra.mxu1 %v806_v3 }
  0x69   : > { %694 = vmatprep.subr.bf16.mxu0 %v807_v6  ;;  %714 = vmatprep.subr.bf16.mxu1 %v807_v6 }
  0x6c   : > { %695 = vmatpush3.bf16.msra.mxu0 %v807_v6  ;;  %722 = vmatpush3.bf16.msra.mxu1 %v807_v6 }
  0x6d   : > { %696 = vmatprep.subr.bf16.mxu0 %v808_v7  ;;  %715 = vmatprep.subr.bf16.mxu1 %v808_v7 }
  0x70   : > { %697 = vmatpush3.bf16.msra.mxu0 %v808_v7  ;;  %723 = vmatpush3.bf16.msra.mxu1 %v808_v7 }
  0x71   : > { %698 = vmatprep.subr.bf16.mxu0 %v809_v8  ;;  %716 = vmatprep.subr.bf16.mxu1 %v809_v8 }
  0x74   : > { %699 = vmatpush3.bf16.msra.mxu0 %v809_v8  ;;  %724 = vmatpush3.bf16.msra.mxu1 %v809_v8 }
  0x75   : > { %700 = vmatprep.subr.bf16.mxu0 %v810_v9  ;;  %717 = vmatprep.subr.bf16.mxu1 %v810_v9 }
  0x78   : > { %701 = vmatpush3.bf16.msra.mxu0 %v810_v9  ;;  %725 = vmatpush3.bf16.msra.mxu1 %v810_v9 }
  0x7b   : > { %703 = vmatmul.mubr.bf16.vlgmr.msra.gmra.mrb[0].mxu0 %v813_v10  ;;  %707 = vmatmul.mubr.bf16.vlgmr.msra.gmra.mrb[0].mxu1 %v814_v11 }
 0x14e   : > { %v704_v13 = vpop.f32.mrb[0].mxu0  ;;  %v708_v14 = vpop.f32.mrb[0].mxu1 }
 0x14f   : > { %v474_v15 = vadd.f32 %v704_v13, %v666_v12  ;;  %v478_v16 = vadd.f32 %v708_v14, %v666_v12  ;;  %v407_v17 = vpop.f32.mrb[1].mxu0  ;;  %v423_v18 = vpop.f32.mrb[1].mxu1 }
 0x150   : > { %v472_v19 = vadd.f32 %v666_v12, %v407_v17  ;;  %v476_v20 = vadd.f32 %v666_v12, %v423_v18  ;;  %v705_v21 = vpop.f32.mrb[2].mxu0  ;;  %v709_v22 = vpop.f32.mrb[2].mxu1 }
 0x151   : > { %vm482_vm0 = vcmp.ge.f32.partialorder %v474_v15, 0.0  ;;  %v490_v23 = vmul.f32 0.01, %v474_v15  ;;  %vm486_vm1 = vcmp.ge.f32.partialorder %v478_v16, 0.0  ;;  %v494_v24 = vmul.f32 0.01, %v478_v16 }
 0x152   : > { %vm480_vm2 = vcmp.ge.f32.partialorder %v472_v19, 0.0  ;;  %v488_v25 = vmul.f32 0.01, %v472_v19  ;;  %vm484_vm3 = vcmp.ge.f32.partialorder %v476_v20, 0.0  ;;  %v492_v26 = vmul.f32 0.01, %v476_v20 }
 0x153   : > { %v498_v27 = vsel %vm482_vm0, %v474_v15, %v490_v23  ;;  %v502_v28 = vsel %vm486_vm1, %v478_v16, %v494_v24  ;;  %v475_v29 = vadd.f32 %v705_v21, %v666_v12  ;;  %v479_v30 = vadd.f32 %v709_v22, %v666_v12  ;;  %v410_v31 = vpop.f32.mrb[3].mxu0  ;;  %v426_v32 = vpop.f32.mrb[3].mxu1 }
 0x154   : > { %506 = vst [vmem:[%s1168_s10 + $0x10] sm:$0xff] %v498_v27  ;;  %510 = vst [vmem:[%s1168_s10 + $0x30] sm:$0xff] %v502_v28  ;;  %v496_v33 = vsel %vm480_vm2, %v472_v19, %v488_v25  ;;  %v500_v34 = vsel %vm484_vm3, %v476_v20, %v492_v26  ;;  %v473_v35 = vadd.f32 %v666_v12, %v410_v31 }
 0x155   : > { %v477_v36 = vadd.f32 %v666_v12, %v426_v32  ;;  %504 = vst [vmem:[%s1168_s10] sm:$0xff] %v496_v33  ;;  %508 = vst [vmem:[%s1168_s10 + $0x20] sm:$0xff] %v500_v34  ;;  %vm483_vm4 = vcmp.ge.f32.partialorder %v475_v29, 0.0  ;;  %v491_v37 = vmul.f32 0.01, %v475_v29  ;;  %vm487_vm5 = vcmp.ge.f32.partialorder %v479_v30, 0.0 }
 0x156   : > { %v495_v38 = vmul.f32 0.01, %v479_v30  ;;  %vm481_vm6 = vcmp.ge.f32.partialorder %v473_v35, 0.0  ;;  %v489_v39 = vmul.f32 0.01, %v473_v35 }
 0x157   : > { %vm485_vm7 = vcmp.ge.f32.partialorder %v477_v36, 0.0  ;;  %v493_v40 = vmul.f32 0.01, %v477_v36  ;;  %v499_v41 = vsel %vm483_vm4, %v475_v29, %v491_v37 }
 0x158   : > { %v503_v42 = vsel %vm487_vm5, %v479_v30, %v495_v38  ;;  %507 = vst [vmem:[%s1168_s10 + $0x18] sm:$0xff] %v499_v41  ;;  %v497_v43 = vsel %vm481_vm6, %v473_v35, %v489_v39 }
 0x159   : > { %511 = vst [vmem:[%s1168_s10 + $0x38] sm:$0xff] %v503_v42  ;;  %v501_v44 = vsel %vm485_vm7, %v477_v36, %v493_v40  ;;  %505 = vst [vmem:[%s1168_s10 + $0x8] sm:$0xff] %v497_v43 }
 0x15a   : > { %509 = vst [vmem:[%s1168_s10 + $0x28] sm:$0xff] %v501_v44 }
 0x15b   : > { %886 = shalt.err (!%p883_p5)
}
 0x15c   : > { %s887_s29 = scalar_lea.hbm %s1181_s19, 1024  ;;  %s891_s20 = scalar_lea.hbm %s1237_s3, 2048 }
 0x15d   : > { %p888_p9 = scmp.ne.s32.totalorder %s1181_s19, %s887_s29  ;;  %p892_p3 = scmp.lt.u32.totalorder %s1181_s19, %s1237_s3 }
 0x15e   : > { %p893_p7 = scmp.lt.u32.totalorder %s891_s20, %s887_s29  ;;  %p895_p4 = scmp.lt.u32.totalorder %s887_s29, %s1181_s19 }
 0x15f   : > { %p889_p1 = pnand %p888_p9, %p1087_p10 }
 0x160   : > { %p894_p13 = por %p893_p7, %p892_p3 }
 0x161   : > { %p890_p2 = pneg %p889_p1 }
 0x162   : > { %p896_p6 = por %p895_p4, %p894_p13 }
 0x164   : > { %p897_p8 = pnand %p896_p6, %p890_p2 }
 0x166   : > { %900 = shalt.err (!%p897_p8)
}
 0x167   : > { %s966_s10 = smov 128   ;;  %s967_s9 = smov 8  }
 0x168   : > { %732 = dma.vmem_to_hbm [thread:$0]  (%p1087_p10), %s1176_s11, 1024, %s1181_s19, %s513_s25, %s966_s10, %s966_s10, %s967_s9  }
 0x169 PF: > { %s542_s15 = sand.u32 1, %s939_s12   ;;  %p1255_p12 = scmp.ne.s32.totalorder %s1245_s23, 0 }
 0x16a   : > { %p1256_p11 = scmp.ge.s32.totalorder %s959_s17, 2  ;;  %s543_s18 = scalar_lea.sflag [#allocation5], %s542_s15 }
 0x16c   : > { %p743_p0 = pnand %p1256_p11, %p1255_p12 }
 0x16e   : > { %934 = dma.done.wait (!%p743_p0), %s543_s18, 1024  }
 0x16f   : > { %936 = vsyncadd (!%p743_p0), %s543_s18, 4294966272  ;;  %s20_s17 = sadd.s32 1, %s959_s17   ;;  %s1257_s12 = smov %s943_s13 }
 0x170   : > { %p17_p5 = scmp.ge.s32.totalorder %s20_s17, 4   ;;  %s1258_s13 = smov %s947_s14 }
 0x171   : > { %s1259_s14 = smov %s1096_s5  ;;  %s1260_s15 = smov %s955_s16 }
 0x172   : > { %s1261_s16 = smov %s1263_s28  ;;  %19 = sbr.rel (!%p17_p5) target bundleno = 7 (0x7), region = 93 }
 0x179   :  { %548 = vsyncpa [#allocation4], 1 }
 0x17a   :  { %550 = vsyncpa [#allocation4 + $0x1], 1 }
 0x17b   :  { %551 = vsyncpa [#allocation7], 1 }
 0x17c   :  { %552 = vsyncpa [#allocation5], 1 }
 0x17d   :  { %554 = vsyncpa [#allocation5 + $0x1], 1 }

</bundles_post_ra>
